<compile_context>
chip_gen: v5e
topology: v5e:2x2
jax: 0.10.0
libtpu: 0.0.40
codegen_flags: <defaults>
</compile_context>

<pallas_src>
import jax
import jax.numpy as jnp
from jax.experimental import pallas as pl
from jax.experimental.pallas import tpu as pltpu

_LANE = 128


def _round_up(n, m):
    return ((n + m - 1) // m) * m


def _vmem_budget_bytes():
    """~75% of physical VMEM per TensorCore (headroom for Mosaic scratch)."""
    try:
        cap = int(pltpu.get_tpu_info().vmem_capacity_bytes)
    except Exception:
        cap = 64 << 20  # conservative fallback, safe on v5e / v6e / v7x
    return int(cap * 0.75)


# --------------------------------------------------------------------------
# Kernels
# --------------------------------------------------------------------------
def _dan_kernel(x_ref, w1_ref, b1_ref, w2_ref, b2_ref, o_ref):
    # fc1 on the MXU: bf16 inputs, f32 accumulation. x is cast in-kernel so the
    # wrapper never pays an extra HBM pass for the cast.
    x = x_ref[...].astype(jnp.bfloat16)
    h = jnp.dot(x, w1_ref[...], preferred_element_type=jnp.float32)
    h = jnp.maximum(h + b1_ref[...], 0.0)          # bias + ReLU in f32

    # dropout1 / dropout2: identity (eval mode)

    logits = jnp.dot(h.astype(jnp.bfloat16), w2_ref[...],
                     preferred_element_type=jnp.float32) + b2_ref[...]

    # numerically stable log_softmax over the class axis (dim=1)
    m = jnp.max(logits, axis=-1, keepdims=True)
    shifted = logits - m
    lse = jnp.log(jnp.sum(jnp.exp(shifted), axis=-1, keepdims=True))
    o_ref[...] = (shifted - lse).astype(o_ref.dtype)


def _dan_ksplit_kernel(x_ref, w1_ref, b1_ref, w2_ref, b2_ref, o_ref, acc_ref):
    # Grid = (batch tiles, K tiles); K is the fc1 contraction dim ("arbitrary").
    k = pl.program_id(1)

    @pl.when(k == 0)
    def _():
        acc_ref[...] = jnp.zeros_like(acc_ref)

    acc_ref[...] += jnp.dot(x_ref[...].astype(jnp.bfloat16), w1_ref[...],
                            preferred_element_type=jnp.float32)

    @pl.when(k == pl.num_programs(1) - 1)
    def _():
        h = jnp.maximum(acc_ref[...] + b1_ref[...], 0.0)
        logits = jnp.dot(h.astype(jnp.bfloat16), w2_ref[...],
                         preferred_element_type=jnp.float32) + b2_ref[...]
        m = jnp.max(logits, axis=-1, keepdims=True)
        shifted = logits - m
        lse = jnp.log(jnp.sum(jnp.exp(shifted), axis=-1, keepdims=True))
        o_ref[...] = (shifted - lse).astype(o_ref.dtype)


# --------------------------------------------------------------------------
# Wrappers
# --------------------------------------------------------------------------
def _forward_resident(x, w1_bf, b1_f, w2_bf, b2_f, budget):
    """Fast path: w1/b1/w2/b2 stay resident in VMEM, 1-D batch grid."""
    B, in_features = x.shape
    h_pad = w1_bf.shape[1]
    n_classes = w2_bf.shape[1]

    mult = 16 if x.dtype == jnp.bfloat16 else 8   # sublane packing of the x tile
    b_aligned = _round_up(B, mult)
    row_x_bytes = in_features * x.dtype.itemsize

    # Budget resident operands at 2 buffers (worst case if the pipeliner ignores
    # the single-buffer request).
    weight_bytes = 2 * ((w1_bf.size + w2_bf.size) * 2 + (b1_f.size + b2_f.size) * 4)

    # Per-batch-row VMEM: double-buffered x tile, f32 h + bf16 h copy,
    # double-buffered f32 out tile, ~25% slack for compiler temporaries.
    per_row = int((2 * row_x_bytes + h_pad * 6 + 2 * n_classes * 4) * 1.25)
    avail = max(budget - weight_bytes - (4 << 20), 1 << 20)
    tb_vmem = max(avail // per_row, mult)

    # Bandwidth target: >= ~1 MiB of x per grid step.
    tb_bw = max((1 << 20) // max(row_x_bytes, 1), 256)

    tb = min(tb_vmem, tb_bw, 8192, b_aligned)
    tb = max((tb // mult) * mult, mult)
    # Keep several grid steps for pipelining / v7x megacore when the batch is
    # large enough, but never drop a step below ~512 KiB of x.
    if pl.cdiv(b_aligned, tb) < 8:
        tb_floor = _round_up(max((512 << 10) // max(row_x_bytes, 1), mult), mult)
        tb_steps = _round_up(pl.cdiv(b_aligned, 8), mult)
        tb = min(tb, max(tb_steps, tb_floor))

    grid = (pl.cdiv(B, tb),)

    def call(single_buffer_weights):
        res = (dict(pipeline_mode=pl.Buffered(1)) if single_buffer_weights else {})
        return pl.pallas_call(
            _dan_kernel,
            out_shape=jax.ShapeDtypeStruct((B, n_classes), jnp.float32),
            grid=grid,
            in_specs=[
                pl.BlockSpec((tb, in_features), lambda i: (i, 0)),       # x (streamed)
                pl.BlockSpec((in_features, h_pad), lambda i: (0, 0), **res),  # w1
                pl.BlockSpec((1, h_pad), lambda i: (0, 0), **res),            # b1
                pl.BlockSpec((h_pad, n_classes), lambda i: (0, 0), **res),    # w2
                pl.BlockSpec((1, n_classes), lambda i: (0, 0), **res),        # b2
            ],
            out_specs=pl.BlockSpec((tb, n_classes), lambda i: (i, 0)),
            compiler_params=pltpu.CompilerParams(
                dimension_semantics=("parallel",),
                vmem_limit_bytes=budget,
            ),
        )(x, w1_bf, b1_f, w2_bf, b2_f)

    try:
        return call(True)
    except Exception:
        # Fallback if this JAX/Mosaic version rejects Buffered(1) on resident refs.
        return call(False)


def _forward_ksplit(x, w1_bf, b1_f, w2_bf, b2_f, budget):
    """Large-fc1 path: stream w1 over a trailing K grid axis, accumulate in VMEM."""
    B, in_features = x.shape
    h_pad = w1_bf.shape[1]
    n_classes = w2_bf.shape[1]
    elt = x.dtype.itemsize

    mult = 16 if x.dtype == jnp.bfloat16 else 8
    b_aligned = _round_up(B, mult)

    # K tiles must divide the (padded) feature dim exactly: a partial K block
    # would add stale data into the fc1 accumulator.
    k_pad = _round_up(in_features, _LANE)
    if k_pad != in_features:
        # TODO(synk): this pad is one extra HBM pass over x; only hit on the
        # large-fc1 fallback path with a non-128-multiple feature dim.
        x = jnp.pad(x, ((0, 0), (0, k_pad - in_features)))
        w1_bf = jnp.pad(w1_bf, ((0, k_pad - in_features), (0, 0)))

    # Largest K tile (multiple of 128 dividing k_pad) with a <= 8 MiB bf16 w1 slab.
    tk = _LANE
    for cand in (2048, 1024, 512, 256, 128):
        if k_pad % cand == 0 and cand * h_pad * 2 <= (8 << 20):
            tk = cand
            break

    small_bytes = 2 * (w2_bf.size * 2 + (b1_f.size + b2_f.size) * 4)
    w1_stream_bytes = 2 * (tk * h_pad * 2)                      # double-buffered
    per_row = int((2 * tk * elt + h_pad * 6 + 2 * n_classes * 4) * 1.25)
    avail = max(budget - small_bytes - w1_stream_bytes - (4 << 20), 1 << 20)
    tb = max(avail // per_row, mult)
    tb = min(tb, 4096, b_aligned)
    tb = max((tb // mult) * mult, mult)

    grid = (pl.cdiv(B, tb), k_pad // tk)

    return pl.pallas_call(
        _dan_ksplit_kernel,
        out_shape=jax.ShapeDtypeStruct((B, n_classes), jnp.float32),
        grid=grid,
        in_specs=[
            pl.BlockSpec((tb, tk), lambda i, k: (i, k)),             # x
            pl.BlockSpec((tk, h_pad), lambda i, k: (k, 0)),          # w1 (streamed K)
            pl.BlockSpec((1, h_pad), lambda i, k: (0, 0)),           # b1
            pl.BlockSpec((h_pad, n_classes), lambda i, k: (0, 0)),   # w2
            pl.BlockSpec((1, n_classes), lambda i, k: (0, 0)),       # b2
        ],
        out_specs=pl.BlockSpec((tb, n_classes), lambda i, k: (i, 0)),
        scratch_shapes=[pltpu.VMEM((tb, h_pad), jnp.float32)],
        compiler_params=pltpu.CompilerParams(
            dimension_semantics=("parallel", "arbitrary"),
            vmem_limit_bytes=budget,
        ),
    )(x, w1_bf, b1_f, w2_bf, b2_f)


def nn2dan_forward(x, w1, b1, w2, b2, *, force_k_split=False):
    """x: [B, input_size]; returns [B, 2] f32 log-probabilities (eval mode)."""
    B, in_features = x.shape
    hidden = w1.shape[1]

    # Lane-dense hidden: zero-pad (exact: relu(0)=0 against zero rows of w2).
    # Use MXU-width 256 only when the hidden dim is already > 128.
    lane_mult = 256 if hidden > _LANE else _LANE
    h_pad = _round_up(hidden, lane_mult)
    if h_pad != hidden:
        w1 = jnp.pad(w1, ((0, 0), (0, h_pad - hidden)))
        b1 = jnp.pad(b1, ((0, 0), (0, h_pad - hidden)))
        w2 = jnp.pad(w2, ((0, h_pad - hidden), (0, 0)))

    # Tiny, one-time casts of the weights; x itself is NOT cast in the wrapper.
    w1_bf = w1.astype(jnp.bfloat16)
    w2_bf = w2.astype(jnp.bfloat16)
    b1_f = b1.astype(jnp.float32)
    b2_f = b2.astype(jnp.float32)

    budget = _vmem_budget_bytes()

    w1_resident_bytes = in_features * h_pad * 2
    use_k_split = force_k_split or (w1_resident_bytes > min(budget // 2, 24 << 20))

    if use_k_split:
        return _forward_ksplit(x, w1_bf, b1_f, w2_bf, b2_f, budget)
    return _forward_resident(x, w1_bf, b1_f, w2_bf, b2_f, budget)


# --------------------------------------------------------------------------
# Reference & params
# --------------------------------------------------------------------------
def nn2dan_reference(x, w1, b1, w2, b2):
    # Pure-JAX reference at the same bf16-input / f32-accumulate precision.
    h = jnp.dot(x.astype(jnp.bfloat16), w1.astype(jnp.bfloat16),
                preferred_element_type=jnp.float32) + b1
    h = jnp.maximum(h, 0.0)
    logits = jnp.dot(h.astype(jnp.bfloat16), w2.astype(jnp.bfloat16),
                     preferred_element_type=jnp.float32) + b2
    return jax.nn.log_softmax(logits, axis=-1)


def init_params(key, input_size, hidden_size, n_classes=2):
    k1, k2, k3, k4 = jax.random.split(key, 4)
    lim1 = 1.0 / jnp.sqrt(input_size)
    lim2 = 1.0 / jnp.sqrt(hidden_size)
    w1 = jax.random.uniform(k1, (input_size, hidden_size), jnp.float32, -lim1, lim1)
    b1 = jax.random.uniform(k2, (1, hidden_size), jnp.float32, -lim1, lim1)
    w2 = jax.random.uniform(k3, (hidden_size, n_classes), jnp.float32, -lim2, lim2)
    b2 = jax.random.uniform(k4, (1, n_classes), jnp.float32, -lim2, lim2)
    return w1, b1, w2, b2


if __name__ == "__main__":
    key = jax.random.PRNGKey(0)
    kx, kp, kx2, kp2 = jax.random.split(key, 4)

    # --- small config (resident-weight fast path) ---
    B, input_size, hidden_size = 8, 32, 32
    x = jax.random.normal(kx, (B, input_size), dtype=jnp.float32)
    w1, b1, w2, b2 = init_params(kp, input_size, hidden_size)

    out = nn2dan_forward(x, w1, b1, w2, b2)
    jax.block_until_ready(out)

    row_sums = jnp.sum(jnp.exp(out), axis=1)
    assert out.shape == (B, 2)
    assert bool(jnp.all(jnp.abs(row_sums - 1.0) < 1e-3))
    ref = nn2dan_reference(x, w1, b1, w2, b2)
    assert bool(jnp.all(jnp.abs(out - ref) < 1e-3))

    # --- exercise the large-fc1 K-split fallback path (forced) ---
    B2, input_size2, hidden_size2 = 64, 4096, 64
    x2 = jax.random.normal(kx2, (B2, input_size2), dtype=jnp.float32)
    p2 = init_params(kp2, input_size2, hidden_size2)
    out2 = nn2dan_forward(x2, *p2, force_k_split=True)
    jax.block_until_ready(out2)
    ref2 = nn2dan_reference(x2, *p2)
    assert out2.shape == (B2, 2)
    assert bool(jnp.all(jnp.abs(out2 - ref2) < 2e-3))
    assert bool(jnp.all(jnp.abs(jnp.sum(jnp.exp(out2), axis=1) - 1.0) < 1e-3))

    print("KERNEL_OK")
</pallas_src>

<mosaic_0001>
module attributes {stable_mosaic.version = 11 : i64} {
  func.func @_dan_kernel(%arg0: i32, %arg1: memref<8x32xf32, #tpu.memory_space<vmem>>, %arg2: memref<32x128xbf16, #tpu.memory_space<vmem>>, %arg3: memref<1x128xf32, #tpu.memory_space<vmem>>, %arg4: memref<128x2xbf16, #tpu.memory_space<vmem>>, %arg5: memref<1x2xf32, #tpu.memory_space<vmem>>, %arg6: memref<8x2xf32, #tpu.memory_space<vmem>>) attributes {dimension_semantics = [#tpu.dimension_semantics<parallel>], iteration_bounds = array<i64: 1>, scalar_prefetch = 0 : i64, scratch_operands = 0 : i64, tpu.core_type = #tpu.core_type<tc>, window_params = [{transform_indices = @transform_0, window_bounds = array<i64: 8, 32>}, {pipeline_mode = #tpu.pipeline_mode<synchronous>, transform_indices = @transform_1, window_bounds = array<i64: 32, 128>}, {pipeline_mode = #tpu.pipeline_mode<synchronous>, transform_indices = @transform_2, window_bounds = array<i64: 1, 128>}, {pipeline_mode = #tpu.pipeline_mode<synchronous>, transform_indices = @transform_3, window_bounds = array<i64: 128, 2>}, {pipeline_mode = #tpu.pipeline_mode<synchronous>, transform_indices = @transform_4, window_bounds = array<i64: 1, 2>}, {transform_indices = @transform_5, window_bounds = array<i64: 8, 2>}]} {
    %c0 = arith.constant 0 : index
    %c0_0 = arith.constant 0 : index
    %0 = vector.load %arg1[%c0, %c0_0] : memref<8x32xf32, #tpu.memory_space<vmem>>, vector<8x32xf32>
    %1 = arith.truncf %0 : vector<8x32xf32> to vector<8x32xbf16>
    %c0_1 = arith.constant 0 : index
    %c0_2 = arith.constant 0 : index
    %2 = vector.load %arg2[%c0_1, %c0_2] : memref<32x128xbf16, #tpu.memory_space<vmem>>, vector<32x128xbf16>
    %cst = arith.constant dense<0.000000e+00> : vector<8x128xf32>
    %3 = tpu.matmul %1, %2, %cst {dimension_numbers = #tpu.dot_dimension_numbers<[1], [0], [0], [1], [0, 0, 1, 1], [], []>} : vector<8x32xbf16>, vector<32x128xbf16>, vector<8x128xf32> -> vector<8x128xf32>
    %c0_3 = arith.constant 0 : index
    %c0_4 = arith.constant 0 : index
    %4 = vector.load %arg3[%c0_3, %c0_4] : memref<1x128xf32, #tpu.memory_space<vmem>>, vector<1x128xf32>
    %5 = vector.broadcast %4 : vector<1x128xf32> to vector<8x128xf32>
    %6 = arith.addf %3, %5 : vector<8x128xf32>
    %cst_5 = arith.constant 0.000000e+00 : f32
    %7 = vector.broadcast %cst_5 : f32 to vector<8x128xf32>
    %8 = arith.maximumf %6, %7 : vector<8x128xf32>
    %9 = arith.truncf %8 : vector<8x128xf32> to vector<8x128xbf16>
    %c0_6 = arith.constant 0 : index
    %c0_7 = arith.constant 0 : index
    %10 = vector.load %arg4[%c0_6, %c0_7] : memref<128x2xbf16, #tpu.memory_space<vmem>>, vector<128x2xbf16>
    %cst_8 = arith.constant dense<0.000000e+00> : vector<8x2xf32>
    %11 = tpu.matmul %9, %10, %cst_8 {dimension_numbers = #tpu.dot_dimension_numbers<[1], [0], [0], [1], [0, 0, 1, 1], [], []>} : vector<8x128xbf16>, vector<128x2xbf16>, vector<8x2xf32> -> vector<8x2xf32>
    %c0_9 = arith.constant 0 : index
    %c0_10 = arith.constant 0 : index
    %12 = vector.load %arg5[%c0_9, %c0_10] : memref<1x2xf32, #tpu.memory_space<vmem>>, vector<1x2xf32>
    %13 = vector.broadcast %12 : vector<1x2xf32> to vector<8x2xf32>
    %14 = arith.addf %11, %13 : vector<8x2xf32>
    %cst_11 = arith.constant dense<0xFF800000> : vector<8xf32>
    %15 = vector.multi_reduction <maximumf>, %14, %cst_11 [1] : vector<8x2xf32> to vector<8xf32>
    %16 = vector.shape_cast %15 : vector<8xf32> to vector<8x1xf32>
    %17 = vector.broadcast %16 : vector<8x1xf32> to vector<8x2xf32>
    %18 = arith.subf %14, %17 : vector<8x2xf32>
    %19 = math.exp %18 : vector<8x2xf32>
    %cst_12 = arith.constant dense<0.000000e+00> : vector<8xf32>
    %20 = vector.multi_reduction <add>, %19, %cst_12 [1] : vector<8x2xf32> to vector<8xf32>
    %21 = vector.shape_cast %20 : vector<8xf32> to vector<8x1xf32>
    %22 = math.log %21 : vector<8x1xf32>
    %23 = vector.broadcast %22 : vector<8x1xf32> to vector<8x2xf32>
    %24 = arith.subf %18, %23 : vector<8x2xf32>
    %c0_13 = arith.constant 0 : index
    %c0_14 = arith.constant 0 : index
    %25 = vector.load %arg6[%c0_13, %c0_14] : memref<8x2xf32, #tpu.memory_space<vmem>>, vector<8x2xf32>
    tpu.vector_store %arg6[%c0_13, %c0_14], %24 {strides = array<i32>} : memref<8x2xf32, #tpu.memory_space<vmem>>, vector<8x2xf32>,
    return
  }
  func.func @transform_0(%arg0: i32) -> (i32, i32) {
    %c0_i32 = arith.constant 0 : i32
    %c0_i32_0 = arith.constant 0 : i32
    return %arg0, %c0_i32 : i32, i32
  }
  func.func @transform_1(%arg0: i32) -> (i32, i32) {
    %c0_i32 = arith.constant 0 : i32
    %c0_i32_0 = arith.constant 0 : i32
    %c0_i32_1 = arith.constant 0 : i32
    return %c0_i32, %c0_i32_0 : i32, i32
  }
  func.func @transform_2(%arg0: i32) -> (i32, i32) {
    %c0_i32 = arith.constant 0 : i32
    %c0_i32_0 = arith.constant 0 : i32
    %c0_i32_1 = arith.constant 0 : i32
    return %c0_i32, %c0_i32_0 : i32, i32
  }
  func.func @transform_3(%arg0: i32) -> (i32, i32) {
    %c0_i32 = arith.constant 0 : i32
    %c0_i32_0 = arith.constant 0 : i32
    %c0_i32_1 = arith.constant 0 : i32
    return %c0_i32, %c0_i32_0 : i32, i32
  }
  func.func @transform_4(%arg0: i32) -> (i32, i32) {
    %c0_i32 = arith.constant 0 : i32
    %c0_i32_0 = arith.constant 0 : i32
    %c0_i32_1 = arith.constant 0 : i32
    return %c0_i32, %c0_i32_0 : i32, i32
  }
  func.func @transform_5(%arg0: i32) -> (i32, i32) {
    %c0_i32 = arith.constant 0 : i32
    %c0_i32_0 = arith.constant 0 : i32
    return %arg0, %c0_i32 : i32, i32
  }
}

module attributes {stable_mosaic.version = 11 : i64} {
  func.func @_dan_kernel(%arg0: i32, %arg1: memref<8x32xf32, #tpu.memory_space<vmem>>, %arg2: memref<32x128xbf16, #tpu.memory_space<vmem>>, %arg3: memref<1x128xf32, #tpu.memory_space<vmem>>, %arg4: memref<128x2xbf16, #tpu.memory_space<vmem>>, %arg5: memref<1x2xf32, #tpu.memory_space<vmem>>, %arg6: memref<8x2xf32, #tpu.memory_space<vmem>>) attributes {dimension_semantics = [#tpu.dimension_semantics<parallel>], iteration_bounds = array<i64: 1>, scalar_prefetch = 0 : i64, scratch_operands = 0 : i64, tpu.core_type = #tpu.core_type<tc>, window_params = [{transform_indices = @transform_0, window_bounds = array<i64: 8, 32>}, {pipeline_mode = #tpu.pipeline_mode<synchronous>, transform_indices = @transform_1, window_bounds = array<i64: 32, 128>}, {pipeline_mode = #tpu.pipeline_mode<synchronous>, transform_indices = @transform_2, window_bounds = array<i64: 1, 128>}, {pipeline_mode = #tpu.pipeline_mode<synchronous>, transform_indices = @transform_3, window_bounds = array<i64: 128, 2>}, {pipeline_mode = #tpu.pipeline_mode<synchronous>, transform_indices = @transform_4, window_bounds = array<i64: 1, 2>}, {transform_indices = @transform_5, window_bounds = array<i64: 8, 2>}]} {
    %c0 = arith.constant 0 : index
    %c0_0 = arith.constant 0 : index
    %0 = vector.load %arg1[%c0, %c0_0] : memref<8x32xf32, #tpu.memory_space<vmem>>, vector<8x32xf32>
    %1 = arith.truncf %0 : vector<8x32xf32> to vector<8x32xbf16>
    %c0_1 = arith.constant 0 : index
    %c0_2 = arith.constant 0 : index
    %2 = vector.load %arg2[%c0_1, %c0_2] : memref<32x128xbf16, #tpu.memory_space<vmem>>, vector<32x128xbf16>
    %cst = arith.constant dense<0.000000e+00> : vector<8x128xf32>
    %3 = tpu.matmul %1, %2, %cst {dimension_numbers = #tpu.dot_dimension_numbers<[1], [0], [0], [1], [0, 0, 1, 1], [], []>} : vector<8x32xbf16>, vector<32x128xbf16>, vector<8x128xf32> -> vector<8x128xf32>
    %c0_3 = arith.constant 0 : index
    %c0_4 = arith.constant 0 : index
    %4 = vector.load %arg3[%c0_3, %c0_4] : memref<1x128xf32, #tpu.memory_space<vmem>>, vector<1x128xf32>
    %5 = vector.broadcast %4 : vector<1x128xf32> to vector<8x128xf32>
    %6 = arith.addf %3, %5 : vector<8x128xf32>
    %cst_5 = arith.constant 0.000000e+00 : f32
    %7 = vector.broadcast %cst_5 : f32 to vector<8x128xf32>
    %8 = arith.maximumf %6, %7 : vector<8x128xf32>
    %9 = arith.truncf %8 : vector<8x128xf32> to vector<8x128xbf16>
    %c0_6 = arith.constant 0 : index
    %c0_7 = arith.constant 0 : index
    %10 = vector.load %arg4[%c0_6, %c0_7] : memref<128x2xbf16, #tpu.memory_space<vmem>>, vector<128x2xbf16>
    %cst_8 = arith.constant dense<0.000000e+00> : vector<8x2xf32>
    %11 = tpu.matmul %9, %10, %cst_8 {dimension_numbers = #tpu.dot_dimension_numbers<[1], [0], [0], [1], [0, 0, 1, 1], [], []>} : vector<8x128xbf16>, vector<128x2xbf16>, vector<8x2xf32> -> vector<8x2xf32>
    %c0_9 = arith.constant 0 : index
    %c0_10 = arith.constant 0 : index
    %12 = vector.load %arg5[%c0_9, %c0_10] : memref<1x2xf32, #tpu.memory_space<vmem>>, vector<1x2xf32>
    %13 = vector.broadcast %12 : vector<1x2xf32> to vector<8x2xf32>
    %14 = arith.addf %11, %13 : vector<8x2xf32>
    %cst_11 = arith.constant dense<0xFF800000> : vector<8xf32>
    %15 = vector.multi_reduction <maximumf>, %14, %cst_11 [1] : vector<8x2xf32> to vector<8xf32>
    %16 = vector.shape_cast %15 : vector<8xf32> to vector<8x1xf32>
    %17 = vector.broadcast %16 : vector<8x1xf32> to vector<8x2xf32>
    %18 = arith.subf %14, %17 : vector<8x2xf32>
    %19 = math.exp %18 : vector<8x2xf32>
    %cst_12 = arith.constant dense<0.000000e+00> : vector<8xf32>
    %20 = vector.multi_reduction <add>, %19, %cst_12 [1] : vector<8x2xf32> to vector<8xf32>
    %21 = vector.shape_cast %20 : vector<8xf32> to vector<8x1xf32>
    %22 = math.log %21 : vector<8x1xf32>
    %23 = vector.broadcast %22 : vector<8x1xf32> to vector<8x2xf32>
    %24 = arith.subf %18, %23 : vector<8x2xf32>
    %c0_13 = arith.constant 0 : index
    %c0_14 = arith.constant 0 : index
    %25 = vector.load %arg6[%c0_13, %c0_14] : memref<8x2xf32, #tpu.memory_space<vmem>>, vector<8x2xf32>
    tpu.vector_store %arg6[%c0_13, %c0_14], %24 {strides = array<i32>} : memref<8x2xf32, #tpu.memory_space<vmem>>, vector<8x2xf32>,
    return
  }
  func.func @transform_0(%arg0: i32) -> (i32, i32) {
    %c0_i32 = arith.constant 0 : i32
    %c0_i32_0 = arith.constant 0 : i32
    return %arg0, %c0_i32 : i32, i32
  }
  func.func @transform_1(%arg0: i32) -> (i32, i32) {
    %c0_i32 = arith.constant 0 : i32
    %c0_i32_0 = arith.constant 0 : i32
    %c0_i32_1 = arith.constant 0 : i32
    return %c0_i32, %c0_i32_0 : i32, i32
  }
  func.func @transform_2(%arg0: i32) -> (i32, i32) {
    %c0_i32 = arith.constant 0 : i32
    %c0_i32_0 = arith.constant 0 : i32
    %c0_i32_1 = arith.constant 0 : i32
    return %c0_i32, %c0_i32_0 : i32, i32
  }
  func.func @transform_3(%arg0: i32) -> (i32, i32) {
    %c0_i32 = arith.constant 0 : i32
    %c0_i32_0 = arith.constant 0 : i32
    %c0_i32_1 = arith.constant 0 : i32
    return %c0_i32, %c0_i32_0 : i32, i32
  }
  func.func @transform_4(%arg0: i32) -> (i32, i32) {
    %c0_i32 = arith.constant 0 : i32
    %c0_i32_0 = arith.constant 0 : i32
    %c0_i32_1 = arith.constant 0 : i32
    return %c0_i32, %c0_i32_0 : i32, i32
  }
  func.func @transform_5(%arg0: i32) -> (i32, i32) {
    %c0_i32 = arith.constant 0 : i32
    %c0_i32_0 = arith.constant 0 : i32
    return %arg0, %c0_i32 : i32, i32
  }
}

</mosaic_0001>

<bundles_post_ra>
// kernel: tpu_custom_call.1
= control target key start
LH: loop header
LB: loop body
LE: loop exit
PB: predicated region body
PF: predicated region fallthrough
CT: control target
= control target key end

     0   :  { %vm43_vm0 = vcmask 261120   ;;  %vm143_vm1 = vcmask 15360   ;;  %s293_s1 = inlined_call_operand.vmem [shape: bf16[32,128], index: 1, kind: input, shape index: {}]   ;;  %s294_s0 = inlined_call_operand.vmem [shape: f32[8,32], index: 0, kind: input, shape index: {}]   ;;  %s295_s3 = inlined_call_operand.vmem [shape: bf16[128,2], index: 3, kind: input, shape index: {}]   ;;  %s296_s2 = inlined_call_operand.vmem [shape: f32[1,128], index: 2, kind: input, shape index: {}]   ;;  %s297_s4 = inlined_call_operand.vmem [shape: f32[1,2], index: 4, kind: input, shape index: {}]   ;;  %s298_s5 = inlined_call_operand.vmem [shape: f32[8,2], index: 5, kind: output, shape index: {}]  }
   0x1   :  { %v203_v0 = vld [vmem:[%s293_s1 + $0x8] sm:$0xff]  ;;  %v211_v1 = vld [vmem:[%s295_s3 + $0x38] sm:$0xff]  ;;  %v202_v2 = vld [vmem:[%s293_s1] sm:$0xff] }
   0x2   :  { %53 = vmatpush.bf16.msra.mxu0 %v203_v0  ;;  %v21_v3 = vld [vmem:[%s294_s0] sm:$0xff]  ;;  %130 = vmatpush.bf16.msra.mxu1 %v211_v1  ;;  %v210_v4 = vld [vmem:[%s295_s3 + $0x30] sm:$0xff]  ;;  %v209_v6 = vld [vmem:[%s295_s3 + $0x28] sm:$0xff] }
   0x3   :  { %v22_v5 = vpack.c.bf16 %v21_v3, %v21_v3  ;;  %v208_v7 = vld [vmem:[%s295_s3 + $0x20] sm:$0xff]  ;;  %v207_v8 = vld [vmem:[%s295_s3 + $0x18] sm:$0xff]  ;;  %v206_v9 = vld [vmem:[%s295_s3 + $0x10] sm:$0xff] }
   0x4   :  { %v205_v10 = vld [vmem:[%s295_s3 + $0x8] sm:$0xff]  ;;  %v204_v11 = vld [vmem:[%s295_s3] sm:$0xff] }
   0x5   :  { %v212_v12 = vld [vmem:[%s296_s2] ss:$0 sm:$0xff] }
   0x6   :  { %54 = vmatpush.bf16.msra.mxu0 %v202_v2  ;;  %131 = vmatpush.bf16.msra.mxu1 %v210_v4  ;;  %v213_v18 = vld [vmem:[%s297_s4] ss:$0 sm:$0xff] }
   0x9   :  { %169 = vmatmul.msk.bf16.vlgmr.msra.gmra.mxu0 %vm43_vm0, %v22_v5 }
   0xa   :  { %132 = vmatpush.bf16.msra.mxu1 %v209_v6 }
   0xe   :  { %133 = vmatpush.bf16.msra.mxu1 %v208_v7 }
  0x12   :  { %134 = vmatpush.bf16.msra.mxu1 %v207_v8 }
  0x16   :  { %135 = vmatpush.bf16.msra.mxu1 %v206_v9 }
  0x1a   :  { %136 = vmatpush.bf16.msra.mxu1 %v205_v10 }
  0x1e   :  { %137 = vmatpush.bf16.msra.mxu1 %v204_v11 }
  0x86   :  { %v56_v13 = vpop.f32.mrf.mxu0 }
  0x87   :  { %v57_v14 = vadd.f32 %v212_v12, %v56_v13 }
  0x89   :  { %v60_v15 = vmax.f32 %v57_v14, 0.0 }
  0x8b   :  { %v61_v16 = vpack.c.bf16 %v60_v15, %v60_v15 }
  0x8d   :  { %138 = vmatmul.bf16.vlgmr.msra.gmra.mxu1 %v61_v16 }
  0x8e   :  { %v58_v17 = vpop.f32.mrf.mxu0 }
 0x10a   :  { %v139_v19 = vpop.f32.mrf.mxu1 }
 0x10b   :  { %v140_v20 = vadd.f32 %v213_v18, %v139_v19 }
 0x10d   :  { %v144_v21 = vsel %vm143_vm1, %v140_v20, -inf }
 0x10e   :  { %145 = vmax.xlane.f32.xlu0 %v144_v21 }
 0x112   :  { %v141_v22 = vpop.f32.mrf.mxu1 }
 0x181   :  { %v146_v23 = vpop.xlane.xlu0 %145 }
 0x182   :  { %v147_v24 = vsub.f32 %v140_v20, %v146_v23 }
 0x184   :  { %v148_v25 = vmul.f32 1.442695, %v147_v24 }
 0x186   :  { %214 = vpow2.f32 %v148_v25 }
 0x18c   :  { %v215_v26 = vpop.eup %214 }
 0x18d   :  { %v150_v27 = vsel %vm143_vm1, %v215_v26, 0.0 }
 0x18e   :  { %151 = vadd.xlane.f32.xlu0 %v150_v27 }
 0x201   :  { %v152_v28 = vpop.xlane.xlu0 %151 }
 0x202   :  { %216 = vlog2.f32 %v152_v28 }
 0x208   :  { %v217_v29 = vpop.eup %216 }
 0x209   :  { %v154_v30 = vmul.f32 0.6931472, %v217_v29 }
 0x20b   :  { %v155_v31 = vsub.f32 %v147_v24, %v154_v30 }
 0x20d   :  { %156 = vst.msk [vmem:[%s298_s5] sm:$0xff] %vm143_vm1, %v155_v31 }

// kernel: tpu_custom_call.1
= control target key start
LH: loop header
LB: loop body
LE: loop exit
PB: predicated region body
PF: predicated region fallthrough
CT: control target
= control target key end

     0   :  { %vm43_vm0 = vcmask 261120   ;;  %vm143_vm1 = vcmask 15360   ;;  %s293_s1 = inlined_call_operand.vmem [shape: bf16[32,128], index: 1, kind: input, shape index: {}]   ;;  %s294_s0 = inlined_call_operand.vmem [shape: f32[8,32], index: 0, kind: input, shape index: {}]   ;;  %s295_s3 = inlined_call_operand.vmem [shape: bf16[128,2], index: 3, kind: input, shape index: {}]   ;;  %s296_s2 = inlined_call_operand.vmem [shape: f32[1,128], index: 2, kind: input, shape index: {}]   ;;  %s297_s4 = inlined_call_operand.vmem [shape: f32[1,2], index: 4, kind: input, shape index: {}]   ;;  %s298_s5 = inlined_call_operand.vmem [shape: f32[8,2], index: 5, kind: output, shape index: {}]  }
   0x1   :  { %v203_v0 = vld [vmem:[%s293_s1 + $0x8] sm:$0xff]  ;;  %v211_v1 = vld [vmem:[%s295_s3 + $0x38] sm:$0xff]  ;;  %v202_v2 = vld [vmem:[%s293_s1] sm:$0xff] }
   0x2   :  { %53 = vmatpush.bf16.msra.mxu0 %v203_v0  ;;  %v21_v3 = vld [vmem:[%s294_s0] sm:$0xff]  ;;  %130 = vmatpush.bf16.msra.mxu1 %v211_v1  ;;  %v210_v4 = vld [vmem:[%s295_s3 + $0x30] sm:$0xff]  ;;  %v209_v6 = vld [vmem:[%s295_s3 + $0x28] sm:$0xff] }
   0x3   :  { %v22_v5 = vpack.c.bf16 %v21_v3, %v21_v3  ;;  %v208_v7 = vld [vmem:[%s295_s3 + $0x20] sm:$0xff]  ;;  %v207_v8 = vld [vmem:[%s295_s3 + $0x18] sm:$0xff]  ;;  %v206_v9 = vld [vmem:[%s295_s3 + $0x10] sm:$0xff] }
   0x4   :  { %v205_v10 = vld [vmem:[%s295_s3 + $0x8] sm:$0xff]  ;;  %v204_v11 = vld [vmem:[%s295_s3] sm:$0xff] }
   0x5   :  { %v212_v12 = vld [vmem:[%s296_s2] ss:$0 sm:$0xff] }
   0x6   :  { %54 = vmatpush.bf16.msra.mxu0 %v202_v2  ;;  %131 = vmatpush.bf16.msra.mxu1 %v210_v4  ;;  %v213_v18 = vld [vmem:[%s297_s4] ss:$0 sm:$0xff] }
   0x9   :  { %169 = vmatmul.msk.bf16.vlgmr.msra.gmra.mxu0 %vm43_vm0, %v22_v5 }
   0xa   :  { %132 = vmatpush.bf16.msra.mxu1 %v209_v6 }
   0xe   :  { %133 = vmatpush.bf16.msra.mxu1 %v208_v7 }
  0x12   :  { %134 = vmatpush.bf16.msra.mxu1 %v207_v8 }
  0x16   :  { %135 = vmatpush.bf16.msra.mxu1 %v206_v9 }
  0x1a   :  { %136 = vmatpush.bf16.msra.mxu1 %v205_v10 }
  0x1e   :  { %137 = vmatpush.bf16.msra.mxu1 %v204_v11 }
  0x86   :  { %v56_v13 = vpop.f32.mrf.mxu0 }
  0x87   :  { %v57_v14 = vadd.f32 %v212_v12, %v56_v13 }
  0x89   :  { %v60_v15 = vmax.f32 %v57_v14, 0.0 }
  0x8b   :  { %v61_v16 = vpack.c.bf16 %v60_v15, %v60_v15 }
  0x8d   :  { %138 = vmatmul.bf16.vlgmr.msra.gmra.mxu1 %v61_v16 }
  0x8e   :  { %v58_v17 = vpop.f32.mrf.mxu0 }
 0x10a   :  { %v139_v19 = vpop.f32.mrf.mxu1 }
 0x10b   :  { %v140_v20 = vadd.f32 %v213_v18, %v139_v19 }
 0x10d   :  { %v144_v21 = vsel %vm143_vm1, %v140_v20, -inf }
 0x10e   :  { %145 = vmax.xlane.f32.xlu0 %v144_v21 }
 0x112   :  { %v141_v22 = vpop.f32.mrf.mxu1 }
 0x181   :  { %v146_v23 = vpop.xlane.xlu0 %145 }
 0x182   :  { %v147_v24 = vsub.f32 %v140_v20, %v146_v23 }
 0x184   :  { %v148_v25 = vmul.f32 1.442695, %v147_v24 }
 0x186   :  { %214 = vpow2.f32 %v148_v25 }
 0x18c   :  { %v215_v26 = vpop.eup %214 }
 0x18d   :  { %v150_v27 = vsel %vm143_vm1, %v215_v26, 0.0 }
 0x18e   :  { %151 = vadd.xlane.f32.xlu0 %v150_v27 }
 0x201   :  { %v152_v28 = vpop.xlane.xlu0 %151 }
 0x202   :  { %216 = vlog2.f32 %v152_v28 }
 0x208   :  { %v217_v29 = vpop.eup %216 }
 0x209   :  { %v154_v30 = vmul.f32 0.6931472, %v217_v29 }
 0x20b   :  { %v155_v31 = vsub.f32 %v147_v24, %v154_v30 }
 0x20d   :  { %156 = vst.msk [vmem:[%s298_s5] sm:$0xff] %vm143_vm1, %v155_v31 }

</bundles_post_ra>
